<compile_context>
chip_gen: v6e
topology: v6e:2x2x1
jax: 0.10.0
libtpu: 0.0.40
codegen_flags: <defaults>
</compile_context>

<pallas_src>
import functools

import numpy as np
import jax
import jax.numpy as jnp
from jax import lax
from jax.experimental import pallas as pl
from jax.experimental.pallas import tpu as pltpu


def _round_up(v, m):
    return ((v + m - 1) // m) * m


# --------------------------------------------------------------------------------------
# Kernel: one (tm x tn) tile of  sum_{i,j} sum_k exp(scale_k * ||a_i - b_j||^2)
# --------------------------------------------------------------------------------------
def _pair_sum_kernel(ib_ref, jb_ref, scales_ref, a_ref, bt_ref, an_ref, bn_ref, out_ref,
                     *, num_kernels, exp_ratios):
    """Grid: 1-D over a precomputed (row-block, col-block) pair list (scalar prefetch).

    Per step: one MXU matmul, 1..K EUP exps (or 1 exp + VPU powers when the scales are
    integer multiples of the smallest), a sublane reduce, and a single lane-dense
    (1, tn) store.  No persistent accumulator is needed: each pair owns its output row.
    """
    # Plain (tm, D) x (D, tn) matmul on the MXU (B pre-transposed in the wrapper).
    ip = jnp.dot(a_ref[...], bt_ref[...], preferred_element_type=jnp.float32)  # (tm, tn)
    # f32 combine with precomputed norms: d_ij = ||a_i||^2 + ||b_j||^2 - 2 a_i.b_j
    d = an_ref[...] + bn_ref[...] - 2.0 * ip
    d = jnp.maximum(d, 0.0)

    if exp_ratios is not None:
        # scale_k = ratio_k * scale_0 with small integer ratios:
        #   exp(scale_k * d) = exp(scale_0 * d) ** ratio_k
        # -> ONE EUP exp per element; the rest is VPU square-and-multiply.
        base = jnp.exp(d * scales_ref[0])
        pow2 = [base]
        while (1 << len(pow2)) <= max(exp_ratios):
            pow2.append(pow2[-1] * pow2[-1])
        ksum = None
        for r in exp_ratios:
            term, bit = None, 0
            while r:
                if r & 1:
                    term = pow2[bit] if term is None else term * pow2[bit]
                r >>= 1
                bit += 1
            ksum = term if ksum is None else ksum + term
    else:
        ksum = jnp.zeros_like(d)
        for k in range(num_kernels):                      # static unroll (K scales)
            ksum = ksum + jnp.exp(d * scales_ref[k])      # EUP exp, SMEM scalar

    # Collapse rows immediately: only a (1, tn) lane-dense store per step
    # (no big accumulator load/add/store traffic -> frees the store slot, esp. v5e).
    out_ref[...] = jnp.sum(ksum, axis=0, keepdims=True)


# --------------------------------------------------------------------------------------
# Tiling / VMEM budget
# --------------------------------------------------------------------------------------
def _vmem_budget():
    """Generation-aware VMEM targets: (tile budget, mosaic vmem_limit_bytes)."""
    tile_budget, limit = 12 * 1024 * 1024, 32 * 1024 * 1024   # safe on v7x (64 MiB / TC)
    try:
        cap = int(getattr(pltpu.get_tpu_info(), "vmem_capacity_bytes", 0) or 0)
    except Exception:
        cap = 0
    if cap >= 100 * 1024 * 1024:                              # v5e / v6e: 128 MiB VMEM
        tile_budget, limit = 40 * 1024 * 1024, 64 * 1024 * 1024
    return tile_budget, limit


def _pick_tiles(m, n, d_feat, feat_bytes, symmetric, budget):
    """Pick (tm, tn, m_pad, n_pad).

    Tiles default to 512x512 (HBM arithmetic intensity on v7x), shrink to fit the VMEM
    budget, then shrink further only when it substantially reduces zero padding.
    Dims whose grid is 1 use the exact size (block == full dim -> no padding at all).
    Symmetric calls use square tiles so tile (i, j) mirrors tile (j, i) exactly.
    """
    tm, tn = 512, 512

    def vmem_bytes(tm_, tn_):
        feat = 2 * (tm_ + tn_) * d_feat * feat_bytes   # double-buffered feature tiles
        live = 4 * tm_ * tn_ * 4                       # ip / d / exp / reduce live f32
        return feat + live + 2 * (tm_ + tn_) * 4

    while vmem_bytes(tm, tn) > budget and max(tm, tn) > 128:
        if tn >= tm:
            tn //= 2
        else:
            tm //= 2

    if symmetric:
        t_cap = min(tm, tn)
        gm = max(1, -(-m // t_cap))
        if gm == 1:
            t = m
            if m > 256:                                # megacore: split only if cheap
                t2 = _round_up(-(-m // 2), 128)
                if (2 * t2) * (2 * t2) <= 1.15 * m * m:
                    gm, t = 2, t2
        else:
            t = _round_up(-(-m // gm), 128)
            for g in range(gm + 1, min(gm + 4, -(-m // 128)) + 1):
                t_g = _round_up(-(-m // g), 128)
                if g * t_g <= 0.9 * (gm * t):          # only if padding drops >= 10%
                    gm, t = g, t_g
        return t, t, gm * t, gm * t

    gm = max(1, -(-m // tm))
    gn = max(1, -(-n // tn))
    if gm == 1 and gn == 1 and max(m, n) > 256:        # megacore: split the long side
        if n >= m:
            t2 = _round_up(-(-n // 2), 128)
            if 2 * t2 <= 1.15 * n:
                gn = 2
        else:
            t2 = _round_up(-(-m // 2), 32)
            if 2 * t2 <= 1.15 * m:
                gm = 2
    tm = m if gm == 1 else _round_up(-(-m // gm), 32)
    if gn > 1:
        tn = _round_up(-(-n // gn), 128)
        for g in range(gn + 1, min(gn + 3, -(-n // 128)) + 1):
            t_g = _round_up(-(-n // g), 128)
            if g * t_g <= 0.9 * (gn * tn):
                gn, tn = g, t_g
    else:
        tn = n
    return tm, tn, gm * tm, gn * tn


# --------------------------------------------------------------------------------------
# Pair-sum wrapper
# --------------------------------------------------------------------------------------
def _pair_kernel_sum(a, b, a_norms, b_norms, *, scales, symmetric, exp_ratios,
                     tile_budget, vmem_limit):
    """sum_{i<M, j<N} sum_k exp(scale_k * ||a_i - b_j||^2), tiled on the TPU.

    symmetric=True (a is b): only upper-triangular tile pairs are visited; strictly
    upper tiles are weighted 2x on the host (exact, since k(a_i,a_j) == k(a_j,a_i)
    bit-for-bit with the norms+dot formulation).
    """
    m, d_feat = a.shape
    n = b.shape[0]
    num_k = int(scales.shape[0])
    feat_bytes = int(a.dtype.itemsize)

    tm, tn, m_pad, n_pad = _pick_tiles(m, n, d_feat, feat_bytes, symmetric, tile_budget)
    grid_m, grid_n = m_pad // tm, n_pad // tn

    if symmetric:
        pairs = [(i, j) for i in range(grid_m) for j in range(i, grid_n)]
        weights = np.array([2.0 if j > i else 1.0 for i, j in pairs], np.float32)
    else:
        pairs = [(i, j) for i in range(grid_m) for j in range(grid_n)]
        weights = np.ones(len(pairs), np.float32)
    num_pairs = len(pairs)
    ib = jnp.asarray(np.array([p[0] for p in pairs], np.int32))
    jb = jnp.asarray(np.array([p[1] for p in pairs], np.int32))

    # Zero-pad ragged sizes; padded pairs are removed analytically below.
    a_p = jnp.pad(a, ((0, m_pad - m), (0, 0)))                    # (m_pad, D)
    bt_p = jnp.pad(b, ((0, n_pad - n), (0, 0))).T                 # (D, n_pad): lane-dense
    an_p = jnp.pad(a_norms, (0, m_pad - m)).reshape(m_pad, 1)     # cols, no in-kernel
    bn_p = jnp.pad(b_norms, (0, n_pad - n)).reshape(1, n_pad)     # transpose

    n_exp = 1 if exp_ratios is not None else num_k
    cost = pl.CostEstimate(
        flops=num_pairs * (2 * tm * tn * d_feat + (6 + 2 * n_exp) * tm * tn),
        transcendentals=num_pairs * n_exp * tm * tn,
        bytes_accessed=num_pairs * (tm + tn) * d_feat * feat_bytes
        + num_pairs * (tm + tn) * 4 + num_pairs * tn * 4,
    )

    partials = pl.pallas_call(
        functools.partial(_pair_sum_kernel, num_kernels=num_k, exp_ratios=exp_ratios),
        out_shape=jax.ShapeDtypeStruct((num_pairs, tn), jnp.float32),
        grid_spec=pltpu.PrefetchScalarGridSpec(
            num_scalar_prefetch=2,                                        # ib, jb tables
            grid=(num_pairs,),
            in_specs=[
                pl.BlockSpec(memory_space=pltpu.MemorySpace.SMEM),          # scales (K,)
                pl.BlockSpec((tm, d_feat), lambda p, ib, jb: (ib[p], 0)),   # A row tile
                pl.BlockSpec((d_feat, tn), lambda p, ib, jb: (0, jb[p])),   # B^T col tile
                pl.BlockSpec((tm, 1), lambda p, ib, jb: (ib[p], 0)),        # ||a_i||^2
                pl.BlockSpec((1, tn), lambda p, ib, jb: (0, jb[p])),        # ||b_j||^2
            ],
            out_specs=pl.BlockSpec((1, tn), lambda p, ib, jb: (p, 0)),      # per-pair row
        ),
        compiler_params=pltpu.CompilerParams(
            dimension_semantics=("parallel",),   # pair list shards across TCs (megacore)
            vmem_limit_bytes=vmem_limit,
        ),
        cost_estimate=cost,
    )(ib, jb, scales, a_p, bt_p, an_p, bn_p)

    total = jnp.sum(partials * jnp.asarray(weights)[:, None])

    # Remove contributions of zero-padded rows/columns analytically:
    #   d(0, v) = ||v||^2  and  d(0, 0) = 0, so
    #   S_pad = P_a * sum_j sum_k exp(s_k ||b_j||^2) + P_b * sum_i sum_k exp(s_k ||a_i||^2)
    #         + P_a * P_b * K.
    p_a = m_pad - m
    p_b = n_pad - n
    if p_a or p_b:
        e_a = jnp.sum(jnp.exp(a_norms[None, :] * scales[:, None]))
        e_b = jnp.sum(jnp.exp(b_norms[None, :] * scales[:, None]))
        total = total - p_a * e_b - p_b * e_a - float(p_a * p_b * num_k)
    return total


# --------------------------------------------------------------------------------------
# Quadratic MK-MMD
# --------------------------------------------------------------------------------------
def mmd_quadratic_batched(x, y, kernel_scales=1.0, bandwidth=None, batch_size=1024,
                          matmul_dtype=jnp.bfloat16):
    del batch_size   # memory knob of the PyTorch BatchedDistance; Pallas picks its tiles.
    x = jnp.asarray(x, jnp.float32)
    y = jnp.asarray(y, jnp.float32)
    nx, d_feat = x.shape
    ny = y.shape[0]
    n = nx + ny
    # NOTE: like the original module, nx < 2 or ny < 2 divides by zero.

    if bandwidth is None:
        # sum_{i,j} ||z_i - z_j||^2 over z = concat([x, y]) via the CENTERED closed form
        # (translation invariant; avoids f32 cancellation for mean-offset embeddings):
        #   = 2 * n * sum_i ||z_i - mean(z)||^2
        mu = (jnp.sum(x, axis=0) + jnp.sum(y, axis=0)) / float(n)
        sum_sq_c = jnp.sum((x - mu) ** 2) + jnp.sum((y - mu) ** 2)
        bandwidth = 2.0 * n * sum_sq_c / float(n * n - n)
    else:
        bandwidth = jnp.asarray(bandwidth, jnp.float32)

    # Multi-kernel scales.  When the user scales are (near-)integer multiples of the
    # smallest one (e.g. [0.5, 1, 2, 4]) the kernel uses a single exp + VPU powers.
    ks_arr = jnp.atleast_1d(jnp.asarray(kernel_scales, jnp.float32))
    exp_ratios = None
    try:
        ks_np = np.atleast_1d(np.asarray(kernel_scales, dtype=np.float64))
        if ks_np.ndim == 1 and ks_np.size > 1 and np.all(ks_np > 0):
            order = np.argsort(ks_np)
            ratios = ks_np[order] / ks_np[order[0]]
            r_int = np.rint(ratios)
            if np.all(np.abs(ratios - r_int) <= 1e-6 * ratios) and int(r_int[-1]) <= 64:
                exp_ratios = tuple(int(v) for v in r_int)
                ks_arr = ks_arr[jnp.asarray(order)]      # base scale first
    except Exception:                                    # traced scales -> plain K exps
        exp_ratios = None
    scales = ks_arr * (-1.0 / bandwidth)                 # (K,), negative
    num_k = int(scales.shape[0])

    # Lane-align the feature dim when cheap (zero features add nothing to ||a-b||^2).
    d_128 = _round_up(d_feat, 128)
    d_pad = d_128 if d_128 <= 1.5 * d_feat else _round_up(d_feat, 8)
    if d_pad != d_feat:
        x = jnp.pad(x, ((0, 0), (0, d_pad - d_feat)))
        y = jnp.pad(y, ((0, 0), (0, d_pad - d_feat)))

    # Cast once for the MXU (bf16 by default); norms accumulated in f32 from the *cast*
    # values so in-kernel distances are exact distances of the cast vectors.
    xc = x.astype(matmul_dtype)
    yc = y.astype(matmul_dtype)
    x_norms = jnp.sum(xc.astype(jnp.float32) ** 2, axis=1)   # (nx,)
    y_norms = jnp.sum(yc.astype(jnp.float32) ** 2, axis=1)   # (ny,)

    tile_budget, vmem_limit = _vmem_budget()
    ksum = functools.partial(_pair_kernel_sum, scales=scales, exp_ratios=exp_ratios,
                             tile_budget=tile_budget, vmem_limit=vmem_limit)
    s_xx = ksum(xc, xc, x_norms, x_norms, symmetric=True) - float(nx * num_k)
    s_yy = ksum(yc, yc, y_norms, y_norms, symmetric=True) - float(ny * num_k)
    s_xy = ksum(xc, yc, x_norms, y_norms, symmetric=False)

    return (s_xx / float(nx * (nx - 1))
            + s_yy / float(ny * (ny - 1))
            - 2.0 * s_xy / float(nx * ny))


class MMDBatchedLoss:
    """JAX/Pallas port of pytorch_adapt.layers.MMDBatchedLoss (quadratic MMD only)."""

    def __init__(self, batch_size=1024, kernel_scales=1.0, bandwidth=None,
                 mmd_type="quadratic", matmul_dtype=jnp.bfloat16):
        if mmd_type != "quadratic":
            raise ValueError("mmd_type must be 'quadratic'")
        self.batch_size = batch_size
        self.kernel_scales = kernel_scales
        self.bandwidth = bandwidth
        self.mmd_type = mmd_type
        self.matmul_dtype = matmul_dtype

    def __call__(self, x, y):
        if isinstance(x, (list, tuple)) or isinstance(y, (list, tuple)):
            raise TypeError("List of features not yet supported")
        # check_batch_sizes is a no-op for mmd_type == 'quadratic'
        return mmd_quadratic_batched(x, y, self.kernel_scales, self.bandwidth,
                                     self.batch_size, self.matmul_dtype)


# --------------------------------------------------------------------------------------
# Pure-JAX reference (same math, unbatched) for correctness checking
# --------------------------------------------------------------------------------------
def _mmd_quadratic_reference(x, y, kernel_scales=1.0, bandwidth=None):
    x = jnp.asarray(x, jnp.float32)
    y = jnp.asarray(y, jnp.float32)
    nx, ny = x.shape[0], y.shape[0]
    n = nx + ny

    def sqd(a, b):
        return jnp.sum((a[:, None, :] - b[None, :, :]) ** 2, axis=-1)

    xx, yy, zz = sqd(x, x), sqd(y, y), sqd(x, y)
    if bandwidth is None:
        bandwidth = (jnp.sum(xx) + jnp.sum(yy) + 2 * jnp.sum(zz)) / (n * n - n)
    scales = jnp.atleast_1d(jnp.asarray(kernel_scales, jnp.float32)) * (-1.0 / bandwidth)

    def ksum(d):
        return jnp.sum(jnp.exp(d[None] * scales[:, None, None]), axis=0)

    kxx, kyy, kzz = ksum(xx), ksum(yy), ksum(zz)
    return ((jnp.sum(kxx) - jnp.trace(kxx)) / (nx * (nx - 1))
            + (jnp.sum(kyy) - jnp.trace(kyy)) / (ny * (ny - 1))
            - 2.0 * jnp.sum(kzz) / (nx * ny))


if __name__ == "__main__":
    key = jax.random.PRNGKey(0)
    kx, ky = jax.random.split(key)
    nx, ny, dfeat = 8, 8, 32
    x = jax.random.normal(kx, (nx, dfeat), jnp.float32)
    y = jax.random.normal(ky, (ny, dfeat), jnp.float32) + 0.5

    ref = _mmd_quadratic_reference(x, y)

    # 1) Structural exactness: f32-matmul path vs pure-JAX reference (tight tolerance).
    loss_f32 = MMDBatchedLoss(batch_size=8, matmul_dtype=jnp.float32)
    out = jax.block_until_ready(loss_f32(x, y))
    assert jnp.allclose(out, ref, rtol=5e-3, atol=1e-5), (out, ref)

    # 2) Default bf16-MXU path (perf configuration) — looser tolerance for the cast.
    loss_bf16 = MMDBatchedLoss(batch_size=8)
    out_bf = jax.block_until_ready(loss_bf16(x, y))
    assert jnp.allclose(out_bf, ref, rtol=2e-2, atol=1e-3), (out_bf, ref)

    # 3) Geometric multi-scale path (single in-kernel exp + VPU powers).
    scales_geo = jnp.array([0.5, 1.0, 2.0, 4.0], jnp.float32)
    loss_mk = MMDBatchedLoss(batch_size=8, kernel_scales=scales_geo,
                             matmul_dtype=jnp.float32)
    out_mk = jax.block_until_ready(loss_mk(x, y))
    ref_mk = _mmd_quadratic_reference(x, y, kernel_scales=scales_geo)
    assert jnp.allclose(out_mk, ref_mk, rtol=5e-3, atol=1e-5), (out_mk, ref_mk)

    # 4) Ragged sizes + non-geometric scales (K separate in-kernel exps, padding path).
    x2 = jax.random.normal(jax.random.PRNGKey(1), (10, dfeat), jnp.float32)
    y2 = jax.random.normal(jax.random.PRNGKey(2), (12, dfeat), jnp.float32) - 0.3
    scales_ng = jnp.array([1.0, 2.5], jnp.float32)
    loss_pad = MMDBatchedLoss(batch_size=1024, kernel_scales=scales_ng,
                              matmul_dtype=jnp.float32)
    out_pad = jax.block_until_ready(loss_pad(x2, y2))
    ref_pad = _mmd_quadratic_reference(x2, y2, kernel_scales=scales_ng)
    assert jnp.allclose(out_pad, ref_pad, rtol=5e-3, atol=1e-5), (out_pad, ref_pad)

    # 5) Explicit (user-supplied) bandwidth.
    loss_bw = MMDBatchedLoss(batch_size=8, bandwidth=64.0, matmul_dtype=jnp.float32)
    out_bw = jax.block_until_ready(loss_bw(x, y))
    ref_bw = _mmd_quadratic_reference(x, y, bandwidth=64.0)
    assert jnp.allclose(out_bw, ref_bw, rtol=5e-3, atol=1e-5), (out_bw, ref_bw)

    # 6) Multi-tile case: exercises the symmetric upper-triangle pair grid with 2x
    #    weights, the feature-dim lane padding, and the row/col padding correction.
    x3 = jax.random.normal(jax.random.PRNGKey(3), (600, 96), jnp.float32)
    y3 = jax.random.normal(jax.random.PRNGKey(4), (520, 96), jnp.float32) + 0.3
    loss_big = MMDBatchedLoss(kernel_scales=jnp.array([1.0, 2.0, 4.0], jnp.float32),
                              matmul_dtype=jnp.float32)
    out_big = jax.block_until_ready(loss_big(x3, y3))
    ref_big = _mmd_quadratic_reference(x3, y3,
                                       kernel_scales=jnp.array([1.0, 2.0, 4.0]))
    assert jnp.allclose(out_big, ref_big, rtol=1e-2, atol=5e-4), (out_big, ref_big)

    print("KERNEL_OK")
</pallas_src>

<mosaic_0001>
module attributes {stable_mosaic.version = 11 : i64} {
  func.func @_pair_sum_kernel(%arg0: i32, %arg1: memref<1xi32, #tpu.memory_space<smem>>, %arg2: memref<1xi32, #tpu.memory_space<smem>>, %arg3: memref<1xf32, #tpu.memory_space<smem>>, %arg4: memref<8x32xf32, #tpu.memory_space<vmem>>, %arg5: memref<32x8xf32, #tpu.memory_space<vmem>>, %arg6: memref<8x1xf32, #tpu.memory_space<vmem>>, %arg7: memref<1x8xf32, #tpu.memory_space<vmem>>, %arg8: memref<1x8xf32, #tpu.memory_space<vmem>>) attributes {dimension_semantics = [#tpu.dimension_semantics<parallel>], iteration_bounds = array<i64: 1>, scalar_prefetch = 2 : i64, scratch_operands = 0 : i64, tpu.core_type = #tpu.core_type<tc>, window_params = [{transform_indices = @transform_0, window_bounds = array<i64: 1>}, {transform_indices = @transform_1, window_bounds = array<i64: 8, 32>}, {transform_indices = @transform_2, window_bounds = array<i64: 32, 8>}, {transform_indices = @transform_3, window_bounds = array<i64: 8, 1>}, {transform_indices = @transform_4, window_bounds = array<i64: 1, 8>}, {transform_indices = @transform_5, window_bounds = array<i64: 1, 8>}]} {
    %c0 = arith.constant 0 : index
    %c0_0 = arith.constant 0 : index
    %0 = vector.load %arg4[%c0, %c0_0] : memref<8x32xf32, #tpu.memory_space<vmem>>, vector<8x32xf32>
    %c0_1 = arith.constant 0 : index
    %c0_2 = arith.constant 0 : index
    %1 = vector.load %arg5[%c0_1, %c0_2] : memref<32x8xf32, #tpu.memory_space<vmem>>, vector<32x8xf32>
    %cst = arith.constant dense<0.000000e+00> : vector<8x8xf32>
    %2 = tpu.matmul %0, %1, %cst {dimension_numbers = #tpu.dot_dimension_numbers<[1], [0], [0], [1], [0, 0, 1, 1], [], []>} : vector<8x32xf32>, vector<32x8xf32>, vector<8x8xf32> -> vector<8x8xf32>
    %c0_3 = arith.constant 0 : index
    %c0_4 = arith.constant 0 : index
    %3 = vector.load %arg6[%c0_3, %c0_4] : memref<8x1xf32, #tpu.memory_space<vmem>>, vector<8x1xf32>
    %c0_5 = arith.constant 0 : index
    %c0_6 = arith.constant 0 : index
    %4 = vector.load %arg7[%c0_5, %c0_6] : memref<1x8xf32, #tpu.memory_space<vmem>>, vector<1x8xf32>
    %5 = vector.broadcast %3 : vector<8x1xf32> to vector<8x8xf32>
    %6 = vector.broadcast %4 : vector<1x8xf32> to vector<8x8xf32>
    %7 = arith.addf %5, %6 : vector<8x8xf32>
    %cst_7 = arith.constant 2.000000e+00 : f32
    %8 = vector.broadcast %cst_7 : f32 to vector<8x8xf32>
    %9 = arith.mulf %8, %2 : vector<8x8xf32>
    %10 = arith.subf %7, %9 : vector<8x8xf32>
    %cst_8 = arith.constant 0.000000e+00 : f32
    %11 = vector.broadcast %cst_8 : f32 to vector<8x8xf32>
    %12 = arith.maximumf %10, %11 : vector<8x8xf32>
    %cst_9 = arith.constant 0.000000e+00 : f32
    %13 = vector.broadcast %cst_9 : f32 to vector<8x8xf32>
    %c0_10 = arith.constant 0 : index
    %14 = memref.load %arg3[%c0_10] : memref<1xf32, #tpu.memory_space<smem>>
    %15 = vector.broadcast %14 : f32 to vector<8x8xf32>
    %16 = arith.mulf %12, %15 : vector<8x8xf32>
    %17 = math.exp %16 : vector<8x8xf32>
    %18 = arith.addf %13, %17 : vector<8x8xf32>
    %cst_11 = arith.constant dense<0.000000e+00> : vector<8xf32>
    %19 = vector.multi_reduction <add>, %18, %cst_11 [0] : vector<8x8xf32> to vector<8xf32>
    %20 = vector.shape_cast %19 : vector<8xf32> to vector<1x8xf32>
    %c0_12 = arith.constant 0 : index
    %c0_13 = arith.constant 0 : index
    %21 = vector.load %arg8[%c0_12, %c0_13] : memref<1x8xf32, #tpu.memory_space<vmem>>, vector<1x8xf32>
    tpu.vector_store %arg8[%c0_12, %c0_13], %20 {strides = array<i32>} : memref<1x8xf32, #tpu.memory_space<vmem>>, vector<1x8xf32>,
    return
  }
  func.func @transform_0(%arg0: i32, %arg1: memref<1xi32, #tpu.memory_space<smem>>, %arg2: memref<1xi32, #tpu.memory_space<smem>>) -> i32 {
    %c0_i32 = arith.constant 0 : i32
    %c0_i32_0 = arith.constant 0 : i32
    return %c0_i32 : i32
  }
  func.func @transform_1(%arg0: i32, %arg1: memref<1xi32, #tpu.memory_space<smem>>, %arg2: memref<1xi32, #tpu.memory_space<smem>>) -> (i32, i32) {
    %0 = arith.index_cast %arg0 : i32 to index
    %1 = memref.load %arg1[%0] : memref<1xi32, #tpu.memory_space<smem>>
    %c0_i32 = arith.constant 0 : i32
    %c0_i32_0 = arith.constant 0 : i32
    return %1, %c0_i32 : i32, i32
  }
  func.func @transform_2(%arg0: i32, %arg1: memref<1xi32, #tpu.memory_space<smem>>, %arg2: memref<1xi32, #tpu.memory_space<smem>>) -> (i32, i32) {
    %0 = arith.index_cast %arg0 : i32 to index
    %1 = memref.load %arg2[%0] : memref<1xi32, #tpu.memory_space<smem>>
    %c0_i32 = arith.constant 0 : i32
    %c0_i32_0 = arith.constant 0 : i32
    return %c0_i32, %1 : i32, i32
  }
  func.func @transform_3(%arg0: i32, %arg1: memref<1xi32, #tpu.memory_space<smem>>, %arg2: memref<1xi32, #tpu.memory_space<smem>>) -> (i32, i32) {
    %0 = arith.index_cast %arg0 : i32 to index
    %1 = memref.load %arg1[%0] : memref<1xi32, #tpu.memory_space<smem>>
    %c0_i32 = arith.constant 0 : i32
    %c0_i32_0 = arith.constant 0 : i32
    return %1, %c0_i32 : i32, i32
  }
  func.func @transform_4(%arg0: i32, %arg1: memref<1xi32, #tpu.memory_space<smem>>, %arg2: memref<1xi32, #tpu.memory_space<smem>>) -> (i32, i32) {
    %0 = arith.index_cast %arg0 : i32 to index
    %1 = memref.load %arg2[%0] : memref<1xi32, #tpu.memory_space<smem>>
    %c0_i32 = arith.constant 0 : i32
    %c0_i32_0 = arith.constant 0 : i32
    return %c0_i32, %1 : i32, i32
  }
  func.func @transform_5(%arg0: i32, %arg1: memref<1xi32, #tpu.memory_space<smem>>, %arg2: memref<1xi32, #tpu.memory_space<smem>>) -> (i32, i32) {
    %c0_i32 = arith.constant 0 : i32
    %c0_i32_0 = arith.constant 0 : i32
    return %arg0, %c0_i32 : i32, i32
  }
}

</mosaic_0001>

<bundles_post_ra>
// kernel: tpu_custom_call.1
= control target key start
LH: loop header
LB: loop body
LE: loop exit
PB: predicated region body
PF: predicated region fallthrough
CT: control target
= control target key end

     0   :  { %v288_v0 = vmov 0.0   ;;  %vm289_vm0 = vmmov 0   ;;  %s362_s0 = inlined_call_operand.<no memory space> [shape: s32[1], index: 0, kind: input, shape index: {}]   ;;  %s363_s1 = inlined_call_operand.<no memory space> [shape: s32[1], index: 1, kind: input, shape index: {}]   ;;  %s364_s2 = inlined_call_operand.<no memory space> [shape: f32[1], index: 2, kind: input, shape index: {}]   ;;  %s365_s3 = inlined_call_operand.vmem [shape: f32[8,32], index: 3, kind: input, shape index: {}]   ;;  %s366_s4 = inlined_call_operand.vmem [shape: f32[32,8], index: 4, kind: input, shape index: {}]   ;;  %s367_s5 = inlined_call_operand.vmem [shape: f32[8,1], index: 5, kind: input, shape index: {}]   ;;  %s368_s6 = inlined_call_operand.vmem [shape: f32[1,8], index: 6, kind: input, shape index: {}]   ;;  %s369_s7 = inlined_call_operand.hbm [shape: f32[1,8], index: 7, kind: output, shape index: {}]  }
   0x1   :  { %p75_p0 = scmp.lt.s32.totalorder %s363_s1, 0  ;;  %p69_p1 = scmp.lt.s32.totalorder %s362_s0, 0  ;;  %248 = vmatprep.subr.mxu0 %v288_v0  ;;  %256 = vmatprep.mubr.msk.f32.mxu0 %vm289_vm0, %v288_v0 }
   0x2   :  { %15 = vsyncpa [#allocation7], 0  ;;  %v290_v1 = vmov 0   ;;  %vm96_vm1 = vcmask 261120   ;;  %v188_v15 = vstv %s364_s2  ;;  %vm193_vm2 = vcmask 64512  }
   0x3   :  { %s371_s1 = smov (!%p75_p0, %s363_s1), 0  ;;  %263 = vset.pattern.permute.xlu0 %v290_v1  ;;  %s373_s0 = smov (!%p69_p1, %s362_s0), 0  ;;  %vm201_vm3 = vcmask 57344  }
   0x4   :  { %s239_s9 = sshll.u32 %s371_s1, 3  ;;  %s238_s13 = sshll.u32 %s373_s0, 3 }
   0x5   :  { %s78_s12 = scalar_lea.vmem %s366_s4, %s239_s9  ;;  %s84_s16 = scalar_lea.vmem %s367_s5, %s238_s13 }
   0x6   :  { %v95_v2 = vld [vmem:[%s78_s12 + $0x18] sm:$0xff]  ;;  %v94_v3 = vld [vmem:[%s78_s12 + $0x10] sm:$0xff]  ;;  %v170_v4 = vld [vmem:[%s84_s16] sm:$0xff]  ;;  %s72_s19 = scalar_lea.vmem %s365_s3, %s238_s13  ;;  %s89_s5 = scalar_lea.vmem %s368_s6, %s371_s1 }
   0x7   :  { %249 = vmatpush3.msra.mxu0 %v95_v2  ;;  %v93_v5 = vld [vmem:[%s78_s12 + $0x8] sm:$0xff]  ;;  %174 = vperm.xlu0 %263, %v170_v4   ;;  %v92_v6 = vld [vmem:[%s78_s12] sm:$0xff]  ;;  %s291_s1 = smov [#allocation6]  }
   0x8   :  { %250 = vmatprep.subr.mxu0 %v288_v0  ;;  %v91_v7 = vld [vmem:[%s72_s19] sm:$0xff]  ;;  %s209_s6 = sshll.u32 %s291_s1, 4  ;;  %s210_s6 = int_to_ptr.vmem [resolvable:$true] %s209_s6 }
   0x9   :  { %251 = vmatpush3.msra.mxu0 %v94_v3  ;;  %v242_v8 = vld [vmem:[%s89_s5] ss:$0 sm:$0xff]  ;;  %s266_s21 = scalar_lea.vmem %s210_s6, 16  ;;  %s270_s2 = scalar_lea.vmem %s210_s6, 32 }
   0xa   :  { %252 = vmatprep.subr.mxu0 %v288_v0  ;;  %p267_p2 = scmp.ne.s32.totalorder %s210_s6, %s266_s21  ;;  %p271_p3 = scmp.lt.s32.totalorder %s210_s6, %s210_s6 }
   0xb   :  { %253 = vmatpush3.msra.mxu0 %v93_v5  ;;  %p272_p4 = scmp.lt.s32.totalorder %s270_s2, %s266_s21 }
   0xc   :  { %254 = vmatprep.subr.mxu0 %v288_v0 }
   0xd   :  { %255 = vmatpush3.msra.mxu0 %v92_v6  ;;  %p273_p5 = por %p272_p4, %p271_p3 }
   0xe   :  { %257 = vmatmul.mubr.msk.f32.vlgmr.msra.gmra.mxu0 %vm96_vm1, %v91_v7 }
   0xf   :  { %p274_p6 = pnand %p273_p5, %p267_p2 }
  0x82   :  { %v175_v9 = vpop.permute.xlu0 %174 }
  0x83   :  { %v183_v10 = vadd.f32 %v242_v8, %v175_v9 }
  0xce   :  { %v166_v11 = vpop.f32.mrf.mxu0 }
  0xcf   :  { %v184_v12 = vmul.f32 2.0, %v166_v11 }
  0xd0   :  { %v258_v13 = vpop.f32.mrf.mxu0 }
  0xd1   :  { %v185_v14 = vsub.f32 %v183_v10, %v184_v12 }
  0xd3   :  { %v186_v16 = vmax.f32 %v185_v14, 0.0 }
  0xd5   :  { %v189_v17 = vmul.f32 %v188_v15, %v186_v16 }
  0xd7   :  { %v190_v18 = vmul.f32 1.442695, %v189_v17 }
  0xd9   :  { %264 = vpow2.f32 %v190_v18 }
  0xe6   :  { %v265_v19 = vpop.eup %264 }
  0xe7   :  { %v194_v20 = vsel %vm193_vm2, %v265_v19, 0.0 }
  0xe8   :  { %v195_v21 = vrot.slane %v194_v20, 4 }
  0xea   :  { %v196_v22 = vadd.f32 %v195_v21, %v194_v20 }
  0xec   :  { %v197_v23 = vrot.slane %v196_v22, 2 }
  0xee   :  { %v198_v24 = vadd.f32 %v197_v23, %v196_v22 }
  0xf0   :  { %v199_v25 = vrot.slane %v198_v24, 1 }
  0xf2   :  { %v200_v26 = vadd.f32 %v199_v25, %v198_v24 }
  0xf4   :  { %202 = vst.msk [vmem:[#allocation6] sm:$0x1] %vm201_vm3, %v200_v26 }
  0xf5   :  { %277 = shalt.err (!%p274_p6)
}
  0xf6   :  { %212 = dma.vmem_to_hbm [thread:$0]  %s210_s6, 16, %s369_s7, [#allocation7]  }
  0xf7   :  { %286 = dma.done.wait [#allocation7], 16  }
  0xf8   :  { %287 = vsyncadd [#allocation7], 4294967280 }
  0xf9   :  { %216 = vsyncpa [#allocation7], 1 }

</bundles_post_ra>
